<compile_context>
chip_gen: v6e
topology: v6e:2x2x1
jax: 0.10.0
libtpu: 0.0.40
codegen_flags: <defaults>
</compile_context>

<pallas_src>
import functools

import jax
import jax.numpy as jnp
from jax.experimental import pallas as pl
from jax.experimental.pallas import tpu as pltpu


def _am_loss_kernel(cos_ref, lab_ref, loss_ref, *, margin, scale):
    """Per batch tile: margin-shifted logits + numerically stable per-row CE."""
    cos = cos_ref[...].astype(jnp.float32)            # (tb, C)
    lab = lab_ref[...]                                # (tb, 1) int32
    tb, num_classes = cos.shape

    col = jax.lax.broadcasted_iota(jnp.int32, (tb, num_classes), 1)
    is_target = col == lab                            # boolean, no f32 one-hot

    # logits = s * (cosine - m * onehot)  without materializing the one-hot
    logits = jnp.where(is_target, scale * (cos - margin), scale * cos)

    # Numerically-stable cross entropy per row.
    mx = jnp.max(logits, axis=-1, keepdims=True)
    lse = mx + jnp.log(jnp.sum(jnp.exp(logits - mx), axis=-1, keepdims=True))
    true_logit = jnp.sum(jnp.where(is_target, logits, 0.0),
                         axis=-1, keepdims=True)
    loss_ref[...] = lse - true_logit                  # (tb, 1) per-row loss


def _choose_tile_b(batch, num_classes, itemsize, sublane):
    """Largest batch tile whose double-buffered cosine slab stays ~<= 8 MiB."""
    budget = 8 * 1024 * 1024
    t = budget // (2 * num_classes * itemsize)
    t = max(sublane, min(1024, (t // sublane) * sublane))
    # No point tiling beyond the (sublane-rounded) batch.
    batch_rounded = -(-batch // sublane) * sublane
    return min(t, batch_rounded)


def am_loss(cosine, label, margin=0.3, scale=32.0, tile_b=None):
    """AMLoss.forward(cosine, label) implemented with pl.pallas_call."""
    B, C = cosine.shape
    itemsize = jnp.dtype(cosine.dtype).itemsize
    sublane = 16 if itemsize == 2 else 8

    if tile_b is None:
        tile_b = _choose_tile_b(B, C, itemsize, sublane)
    else:
        tile_b = max(sublane, (tile_b // sublane) * sublane)

    # Pad the batch up to a multiple of tile_b; padded rows are dropped in the
    # final JAX-side reduction, so no in-kernel masking is needed.
    B_pad = -(-B // tile_b) * tile_b
    if B_pad != B:
        cosine = jnp.pad(cosine, ((0, B_pad - B), (0, 0)))
        label = jnp.pad(label, (0, B_pad - B))
    label2d = label.astype(jnp.int32).reshape(B_pad, 1)

    kernel = functools.partial(
        _am_loss_kernel,
        margin=float(margin),   # Python literals -> no captured tracer consts
        scale=float(scale),
    )

    num_tiles = B_pad // tile_b

    # Generous VMEM limit for the chosen tile (input double-buffer + f32 temps).
    vmem_need = 6 * tile_b * C * 4 + 4 * tile_b * 4 + (1 << 20)
    vmem_limit = int(min(max(vmem_need, 32 * 1024 * 1024), 100 * 1024 * 1024))

    cost = pl.CostEstimate(
        flops=10 * B_pad * C,
        transcendentals=B_pad * C,
        bytes_accessed=B_pad * C * itemsize + B_pad * 4 + B_pad * 4,
    )

    row_losses = pl.pallas_call(
        kernel,
        out_shape=jax.ShapeDtypeStruct((B_pad, 1), jnp.float32),
        grid_spec=pltpu.PrefetchScalarGridSpec(
            num_scalar_prefetch=0,
            grid=(num_tiles,),
            in_specs=[
                pl.BlockSpec((tile_b, C), lambda i: (i, 0)),
                pl.BlockSpec((tile_b, 1), lambda i: (i, 0)),
            ],
            out_specs=pl.BlockSpec((tile_b, 1), lambda i: (i, 0)),
        ),
        compiler_params=pltpu.CompilerParams(
            dimension_semantics=("parallel",),   # independent per-tile outputs
            vmem_limit_bytes=vmem_limit,
        ),
        cost_estimate=cost,
    )(cosine, label2d)

    # CrossEntropyLoss(reduction='sum') / batch  ==  mean over (original) batch
    return jnp.sum(row_losses[:B, 0]) / B


def _am_loss_ref(cosine, label, margin=0.3, scale=32.0):
    """Pure-JAX reference mirroring the PyTorch module."""
    B, C = cosine.shape
    onehot = jax.nn.one_hot(label, C, dtype=jnp.float32)
    logits = scale * (cosine.astype(jnp.float32) - margin * onehot)
    logp = jax.nn.log_softmax(logits, axis=-1)
    nll = -jnp.take_along_axis(logp, label[:, None], axis=1)[:, 0]
    return jnp.sum(nll) / B


if __name__ == "__main__":
    key = jax.random.PRNGKey(0)
    k1, k2 = jax.random.split(key)

    B, C = 16, 32  # small synthetic shapes: 16 embeddings, 32 classes
    # "cosine" similarities in [-1, 1]
    cosine = jnp.tanh(jax.random.normal(k1, (B, C), dtype=jnp.float32))
    label = jax.random.randint(k2, (B,), 0, C, dtype=jnp.int32)

    loss = am_loss(cosine, label, margin=0.3, scale=32.0)
    loss = jax.block_until_ready(loss)

    ref = _am_loss_ref(cosine, label, margin=0.3, scale=32.0)
    assert jnp.allclose(loss, ref, rtol=1e-5, atol=1e-5), (loss, ref)

    print("KERNEL_OK")
</pallas_src>

<mosaic_0001>
module attributes {stable_mosaic.version = 11 : i64} {
  func.func @_am_loss_kernel(%arg0: i32, %arg1: memref<16x32xf32, #tpu.memory_space<vmem>>, %arg2: memref<16x1xi32, #tpu.memory_space<vmem>>, %arg3: memref<16x1xf32, #tpu.memory_space<vmem>>) attributes {dimension_semantics = [#tpu.dimension_semantics<parallel>], iteration_bounds = array<i64: 1>, scalar_prefetch = 0 : i64, scratch_operands = 0 : i64, tpu.core_type = #tpu.core_type<tc>, window_params = [{transform_indices = @transform_0, window_bounds = array<i64: 16, 32>}, {transform_indices = @transform_1, window_bounds = array<i64: 16, 1>}, {transform_indices = @transform_2, window_bounds = array<i64: 16, 1>}]} {
    %c0 = arith.constant 0 : index
    %c0_0 = arith.constant 0 : index
    %0 = vector.load %arg1[%c0, %c0_0] : memref<16x32xf32, #tpu.memory_space<vmem>>, vector<16x32xf32>
    %c0_1 = arith.constant 0 : index
    %c0_2 = arith.constant 0 : index
    %1 = vector.load %arg2[%c0_1, %c0_2] : memref<16x1xi32, #tpu.memory_space<vmem>>, vector<16x1xi32>
    %2 = tpu.iota {dimensions = array<i32: 1>} : vector<16x32xi32>
    %3 = vector.broadcast %1 : vector<16x1xi32> to vector<16x32xi32>
    %4 = arith.cmpi eq, %2, %3 : vector<16x32xi32>
    %cst = arith.constant 3.000000e-01 : f32
    %5 = vector.broadcast %cst : f32 to vector<16x32xf32>
    %6 = arith.subf %0, %5 : vector<16x32xf32>
    %cst_3 = arith.constant 3.200000e+01 : f32
    %7 = vector.broadcast %cst_3 : f32 to vector<16x32xf32>
    %8 = arith.mulf %7, %6 : vector<16x32xf32>
    %cst_4 = arith.constant 3.200000e+01 : f32
    %9 = vector.broadcast %cst_4 : f32 to vector<16x32xf32>
    %10 = arith.mulf %9, %0 : vector<16x32xf32>
    %11 = arith.select %4, %8, %10 : vector<16x32xi1>, vector<16x32xf32>
    %cst_5 = arith.constant dense<0xFF800000> : vector<16xf32>
    %12 = vector.multi_reduction <maximumf>, %11, %cst_5 [1] : vector<16x32xf32> to vector<16xf32>
    %13 = vector.shape_cast %12 : vector<16xf32> to vector<16x1xf32>
    %14 = vector.broadcast %13 : vector<16x1xf32> to vector<16x32xf32>
    %15 = arith.subf %11, %14 : vector<16x32xf32>
    %16 = math.exp %15 : vector<16x32xf32>
    %cst_6 = arith.constant dense<0.000000e+00> : vector<16xf32>
    %17 = vector.multi_reduction <add>, %16, %cst_6 [1] : vector<16x32xf32> to vector<16xf32>
    %18 = vector.shape_cast %17 : vector<16xf32> to vector<16x1xf32>
    %19 = math.log %18 : vector<16x1xf32>
    %20 = arith.addf %13, %19 : vector<16x1xf32>
    %cst_7 = arith.constant 0.000000e+00 : f32
    %21 = vector.broadcast %cst_7 : f32 to vector<16x32xf32>
    %22 = arith.select %4, %11, %21 : vector<16x32xi1>, vector<16x32xf32>
    %cst_8 = arith.constant dense<0.000000e+00> : vector<16xf32>
    %23 = vector.multi_reduction <add>, %22, %cst_8 [1] : vector<16x32xf32> to vector<16xf32>
    %24 = vector.shape_cast %23 : vector<16xf32> to vector<16x1xf32>
    %25 = arith.subf %20, %24 : vector<16x1xf32>
    %c0_9 = arith.constant 0 : index
    %c0_10 = arith.constant 0 : index
    %26 = vector.load %arg3[%c0_9, %c0_10] : memref<16x1xf32, #tpu.memory_space<vmem>>, vector<16x1xf32>
    tpu.vector_store %arg3[%c0_9, %c0_10], %25 {strides = array<i32>} : memref<16x1xf32, #tpu.memory_space<vmem>>, vector<16x1xf32>,
    return
  }
  func.func @transform_0(%arg0: i32) -> (i32, i32) {
    %c0_i32 = arith.constant 0 : i32
    %c0_i32_0 = arith.constant 0 : i32
    return %arg0, %c0_i32 : i32, i32
  }
  func.func @transform_1(%arg0: i32) -> (i32, i32) {
    %c0_i32 = arith.constant 0 : i32
    %c0_i32_0 = arith.constant 0 : i32
    return %arg0, %c0_i32 : i32, i32
  }
  func.func @transform_2(%arg0: i32) -> (i32, i32) {
    %c0_i32 = arith.constant 0 : i32
    %c0_i32_0 = arith.constant 0 : i32
    return %arg0, %c0_i32 : i32, i32
  }
}

</mosaic_0001>

<bundles_post_ra>
// kernel: tpu_custom_call.1
= control target key start
LH: loop header
LB: loop body
LE: loop exit
PB: predicated region body
PF: predicated region fallthrough
CT: control target
= control target key end

     0   :  { %v87_v0 = vmov 0   ;;  %v15_v4 = vlaneseq  ;;  %vm33_vm0 = vcmask 261120   ;;  %vm68_vm3 = vcmask 7168   ;;  %s127_s1 = inlined_call_operand.vmem [shape: s32[16,1], index: 1, kind: input, shape index: {}]   ;;  %s128_s0 = inlined_call_operand.vmem [shape: f32[16,32], index: 0, kind: input, shape index: {}]   ;;  %s129_s2 = inlined_call_operand.vmem [shape: f32[16,1], index: 2, kind: output, shape index: {}]  }
   0x1   :  { %78 = vset.pattern.permute.xlu0 %v87_v0  ;;  %v13_v1 = vld [vmem:[%s127_s1] sm:$0xff]  ;;  %v14_v2 = vld [vmem:[%s127_s1 + $0x8] sm:$0xff] }
   0x2   :  { %18 = vperm.xlu0 %78, %v13_v1   ;;  %v11_v3 = vld [vmem:[%s128_s0] sm:$0xff]  ;;  %v12_v6 = vld [vmem:[%s128_s0 + $0x8] sm:$0xff]  ;;  %v16_v7 = vand.u32 127, %v15_v4 }
   0x3   :  { %v75_v5 = vadd.f32 -0.3, %v11_v3  ;;  %v29_v9 = vmul.f32 32.0, %v11_v3  ;;  %v76_v10 = vadd.f32 -0.3, %v12_v6  ;;  %v30_v14 = vmul.f32 32.0, %v12_v6 }
   0x5   :  { %v27_v8 = vmul.f32 32.0, %v75_v5  ;;  %v28_v13 = vmul.f32 32.0, %v76_v10 }
   0x6   :  { %21 = vperm.xlu0 %78, %v14_v2  }
  0x7d   :  { %v19_v11 = vpop.permute.xlu0 %18 }
  0x7e   :  { %vm23_vm1 = vcmp.eq.s32.totalorder %v16_v7, %v19_v11 }
  0x7f   :  { %v31_v12 = vsel %vm23_vm1, %v27_v8, %v29_v9  ;;  %v58_v15 = vsel %vm23_vm1, %v27_v8, 0.0 }
  0x80   :  { %v34_v16 = vsel %vm33_vm0, %v31_v12, -inf  ;;  %v60_v31 = vsel %vm33_vm0, %v58_v15, 0.0 }
  0x81   :  { %v22_v17 = vpop.permute.xlu0 %21  ;;  %35 = vmax.xlane.f32.xlu1 %v34_v16 }
  0x82   :  { %vm24_vm2 = vcmp.eq.s32.totalorder %v16_v7, %v22_v17 }
  0x83   :  { %v32_v18 = vsel %vm24_vm2, %v28_v13, %v30_v14  ;;  %v59_v19 = vsel %vm24_vm2, %v28_v13, 0.0 }
  0x84   :  { %v37_v20 = vsel %vm33_vm0, %v32_v18, -inf  ;;  %v63_v32 = vsel %vm33_vm0, %v59_v19, 0.0 }
  0x85   :  { %38 = vmax.xlane.f32.xlu1 %v37_v20 }
 0x10a   :  { %v36_v21 = vpop.xlane.xlu1 %35 }
 0x10b   :  { %v40_v22 = vsub.f32 %v31_v12, %v36_v21 }
 0x10d   :  { %v42_v23 = vmul.f32 1.442695, %v40_v22 }
 0x10e   :  { %v39_v24 = vpop.xlane.xlu1 %38 }
 0x10f   :  { %79 = vpow2.f32 %v42_v23  ;;  %v41_v25 = vsub.f32 %v32_v18, %v39_v24 }
 0x111   :  { %v44_v26 = vmul.f32 1.442695, %v41_v25 }
 0x113   :  { %81 = vpow2.f32 %v44_v26 }
 0x11c   :  { %v80_v27 = vpop.eup %79 }
 0x11d   :  { %v46_v28 = vsel %vm33_vm0, %v80_v27, 0.0 }
 0x11e   :  { %47 = vadd.xlane.f32.xlu0 %v46_v28 }
 0x120   :  { %v82_v29 = vpop.eup %81 }
 0x121   :  { %v49_v30 = vsel %vm33_vm0, %v82_v29, 0.0 }
 0x122   :  { %50 = vadd.xlane.f32.xlu1 %v49_v30 }
 0x126   :  { %61 = vadd.xlane.f32.xlu1 %v60_v31 }
 0x12a   :  { %64 = vadd.xlane.f32.xlu1 %v63_v32 }
 0x1a7   :  { %v48_v33 = vpop.xlane.xlu0 %47 }
 0x1a8   :  { %83 = vlog2.f32 %v48_v33 }
 0x1ab   :  { %v51_v34 = vpop.xlane.xlu1 %50 }
 0x1ac   :  { %85 = vlog2.f32 %v51_v34 }
 0x1af   :  { %v62_v37 = vpop.xlane.xlu1 %61 }
 0x1b3   :  { %v65_v43 = vpop.xlane.xlu1 %64 }
 0x1b5   :  { %v84_v35 = vpop.eup %83 }
 0x1b6   :  { %v53_v36 = vmul.f32 0.6931472, %v84_v35 }
 0x1b8   :  { %v56_v38 = vadd.f32 %v53_v36, %v36_v21 }
 0x1b9   :  { %v86_v39 = vpop.eup %85 }
 0x1ba   :  { %v55_v40 = vmul.f32 0.6931472, %v86_v39  ;;  %v66_v41 = vsub.f32 %v56_v38, %v62_v37 }
 0x1bc   :  { %69 = vst.msk [vmem:[%s129_s2] sm:$0xff] %vm68_vm3, %v66_v41  ;;  %v57_v42 = vadd.f32 %v55_v40, %v39_v24 }
 0x1be   :  { %v67_v44 = vsub.f32 %v57_v42, %v65_v43 }
 0x1c0   :  { %70 = vst.msk [vmem:[%s129_s2 + $0x8] sm:$0xff] %vm68_vm3, %v67_v44 }

</bundles_post_ra>
